<compile_context>
chip_gen: v7x
topology: tpu7x:2x2x1
jax: 0.10.0
libtpu: 0.0.40
codegen_flags: <defaults>
</compile_context>

<pallas_src>
import functools

import jax
import jax.numpy as jnp
from jax.experimental import pallas as pl
from jax.experimental.pallas import tpu as pltpu

OUT_DIM = 10          # nn.Linear(input_size, 10)
TB_MAX = 1024         # max batch rows per tile
TK_MAX = 2048         # max feature (K) columns per tile


def _baseline_kernel(x_ref, w_ref, b_ref, t_ref, kp_ref, partial_ref, acc_ref,
                     *, true_b, tb):
    # x_ref : (TB, TK)        flattened-image tile (streamed)
    # w_ref : (TK, 10)        W^T K-slice
    # b_ref : (1, 10)         bias (resident)
    # t_ref : (TB, 10)        targets[:, 1:, :2] flattened
    # kp_ref: (TB, 10)        keypoints output tile
    # partial_ref: (1, 1)     SMEM per-batch-tile partial sum of squared error
    # acc_ref: (TB, 10) f32   VMEM accumulator across the K grid axis
    i = pl.program_id(0)
    k = pl.program_id(1)
    nk = pl.num_programs(1)

    @pl.when(k == 0)
    def _():
        acc_ref[...] = jnp.zeros_like(acc_ref)

    acc_ref[...] += jnp.dot(x_ref[...], w_ref[...],
                            preferred_element_type=jnp.float32)

    @pl.when(k == nk - 1)
    def _():
        out = acc_ref[...] + b_ref[...]          # broadcast (1,10) over rows
        kp_ref[...] = out.astype(kp_ref.dtype)

        diff = out - t_ref[...]
        # Mask rows past the true batch size (ragged last block reads garbage
        # rows; they are also never written back to the kp output by Pallas).
        row_ids = jax.lax.broadcasted_iota(jnp.int32, diff.shape, 0) + i * tb
        sq = jnp.where(row_ids < true_b, diff * diff, 0.0)
        partial_ref[0, 0] = jnp.sum(sq)


def baseline_forward(image, weight, bias, targets):
    """image: (B, C, H, W); weight: (10, D); bias: (10,); targets: (B, 6, K>=2)."""
    B = image.shape[0]
    x = image.reshape(B, -1).astype(jnp.float32)          # flatten(1), no pad
    D = x.shape[1]

    # ---- Batch tiling: multiple of 8, capped so v7x's 2 TCs both get work.
    half_cap = ((max(1, (B + 1) // 2) + 7) // 8) * 8       # round_up(ceil(B/2), 8)
    TB = min(TB_MAX, half_cap)
    num_b = -(-B // TB)

    # ---- K tiling: TK must divide D and be a multiple of 128 (or TK == D).
    TK = D
    if D > TK_MAX and D % 128 == 0:
        for cand in range(TK_MAX, 0, -128):
            if D % cand == 0:
                TK = cand
                break
    num_k = D // TK

    w_t = weight.T.astype(jnp.float32)                      # (D, 10)
    b_row = bias.reshape(1, OUT_DIM).astype(jnp.float32)    # (1, 10)
    t_flat = targets[:, 1:, :2].reshape(B, OUT_DIM).astype(jnp.float32)

    kernel = functools.partial(_baseline_kernel, true_b=B, tb=TB)

    cost = pl.CostEstimate(
        flops=2 * B * D * OUT_DIM,
        transcendentals=0,
        bytes_accessed=(B * D + D * OUT_DIM + OUT_DIM
                        + 2 * B * OUT_DIM + num_b) * 4)

    # VMEM footprint (10-wide blocks are lane-padded to 128 physically).
    LANES = 128
    vmem_bytes = (2 * TB * TK * 4            # x double buffer
                  + 2 * TK * LANES * 4       # W^T double buffer
                  + 2 * 8 * LANES * 4        # bias
                  + 2 * TB * LANES * 4       # targets
                  + 2 * TB * LANES * 4       # keypoints out
                  + TB * LANES * 4)          # accumulator scratch
    vmem_limit = int(min(64 * 1024 * 1024,
                         max(32 * 1024 * 1024, vmem_bytes * 13 // 10)))

    kp, partials = pl.pallas_call(
        kernel,
        out_shape=(
            jax.ShapeDtypeStruct((B, OUT_DIM), jnp.float32),
            jax.ShapeDtypeStruct((num_b, 1), jnp.float32),
        ),
        grid_spec=pltpu.PrefetchScalarGridSpec(
            num_scalar_prefetch=0,
            grid=(num_b, num_k),
            in_specs=[
                pl.BlockSpec((TB, TK), lambda i, k: (i, k)),       # x
                pl.BlockSpec((TK, OUT_DIM), lambda i, k: (k, 0)),  # W^T
                pl.BlockSpec((1, OUT_DIM), lambda i, k: (0, 0)),   # bias
                pl.BlockSpec((TB, OUT_DIM), lambda i, k: (i, 0)),  # targets
            ],
            out_specs=(
                pl.BlockSpec((TB, OUT_DIM), lambda i, k: (i, 0)),  # keypoints
                pl.BlockSpec((1, 1), lambda i, k: (i, 0),
                             memory_space=pltpu.MemorySpace.SMEM),  # partial loss
            ),
            scratch_shapes=[pltpu.VMEM((TB, OUT_DIM), jnp.float32)],
        ),
        compiler_params=pltpu.CompilerParams(
            dimension_semantics=("parallel", "arbitrary"),
            vmem_limit_bytes=vmem_limit,
        ),
        cost_estimate=cost,
    )(x, w_t, b_row, t_flat)

    keypoints = kp.reshape(-1, 5, 2)              # .view(-1, 5, 2)
    loss = jnp.sum(partials) / (B * OUT_DIM)
    return keypoints, loss


baseline_forward_jit = jax.jit(baseline_forward)


def _reference(image, weight, bias, targets):
    B = image.shape[0]
    x = image.reshape(B, -1).astype(jnp.float32)
    out = x @ weight.T.astype(jnp.float32) + bias.astype(jnp.float32)
    kp = out.reshape(-1, 5, 2)
    tgt = targets[:, 1:, :2].astype(jnp.float32)
    return kp, jnp.mean((kp - tgt) ** 2)


if __name__ == "__main__":
    key = jax.random.PRNGKey(0)
    k_img, k_w, k_b, k_t = jax.random.split(key, 4)

    B, C, H, W = 2, 4, 16, 16
    input_size = C * H * W  # 1024

    image = jax.random.normal(k_img, (B, C, H, W), dtype=jnp.float32)
    # Deterministic "PyTorch-like" init: U(-1/sqrt(D), 1/sqrt(D))
    bound = 1.0 / (input_size ** 0.5)
    weight = jax.random.uniform(k_w, (10, input_size), jnp.float32, -bound, bound)
    bias = jax.random.uniform(k_b, (10,), jnp.float32, -bound, bound)
    # targets: (B, 6, 3); forward uses targets[:, 1:, :2]
    targets = jax.random.normal(k_t, (B, 6, 3), dtype=jnp.float32)

    keypoints, loss = baseline_forward_jit(image, weight, bias, targets)
    jax.block_until_ready((keypoints, loss))

    kp_ref, loss_ref = _reference(image, weight, bias, targets)
    assert keypoints.shape == (B, 5, 2)
    assert jnp.allclose(keypoints, kp_ref, atol=1e-4, rtol=1e-4)
    assert jnp.allclose(loss, loss_ref, atol=1e-5, rtol=1e-5)

    print("KERNEL_OK")
</pallas_src>

<mosaic_0001>
module attributes {stable_mosaic.version = 11 : i64} {
  func.func @_baseline_kernel(%arg0: i32, %arg1: i32, %arg2: memref<8x1024xf32, #tpu.memory_space<vmem>>, %arg3: memref<1024x10xf32, #tpu.memory_space<vmem>>, %arg4: memref<1x10xf32, #tpu.memory_space<vmem>>, %arg5: memref<8x10xf32, #tpu.memory_space<vmem>>, %arg6: memref<8x10xf32, #tpu.memory_space<vmem>>, %arg7: memref<1x1xf32, #tpu.memory_space<smem>>, %arg8: memref<8x10xf32, #tpu.memory_space<vmem>>) attributes {dimension_semantics = [#tpu.dimension_semantics<parallel>, #tpu.dimension_semantics<arbitrary>], iteration_bounds = array<i64: 1, 1>, scalar_prefetch = 0 : i64, scratch_operands = 1 : i64, tpu.core_type = #tpu.core_type<tc>, window_params = [{transform_indices = @transform_0, window_bounds = array<i64: 8, 1024>}, {transform_indices = @transform_1, window_bounds = array<i64: 1024, 10>}, {pipeline_mode = #tpu.pipeline_mode<synchronous>, transform_indices = @transform_2, window_bounds = array<i64: 1, 10>}, {transform_indices = @transform_3, window_bounds = array<i64: 8, 10>}, {transform_indices = @transform_4, window_bounds = array<i64: 8, 10>}, {transform_indices = @transform_5, window_bounds = array<i64: 1, 1>}]} {
    %c0_i32 = arith.constant 0 : i32
    %0 = arith.cmpi eq, %arg1, %c0_i32 : i32
    %1 = arith.extui %0 : i1 to i32
    %c0_i32_0 = arith.constant 0 : i32
    %2 = arith.cmpi ne, %1, %c0_i32_0 : i32
    scf.if %2 {
      %cst_10 = arith.constant 0.000000e+00 : f32
      %12 = vector.broadcast %cst_10 : f32 to vector<8x10xf32>
      %c0_11 = arith.constant 0 : index
      %c0_12 = arith.constant 0 : index
      %13 = vector.load %arg8[%c0_11, %c0_12] : memref<8x10xf32, #tpu.memory_space<vmem>>, vector<8x10xf32>
      tpu.vector_store %arg8[%c0_11, %c0_12], %12 {strides = array<i32>} : memref<8x10xf32, #tpu.memory_space<vmem>>, vector<8x10xf32>,
    } else {
    }
    %c0 = arith.constant 0 : index
    %c0_1 = arith.constant 0 : index
    %3 = vector.load %arg8[%c0, %c0_1] : memref<8x10xf32, #tpu.memory_space<vmem>>, vector<8x10xf32>
    %c0_2 = arith.constant 0 : index
    %c0_3 = arith.constant 0 : index
    %4 = vector.load %arg2[%c0_2, %c0_3] : memref<8x1024xf32, #tpu.memory_space<vmem>>, vector<8x1024xf32>
    %c0_4 = arith.constant 0 : index
    %c0_5 = arith.constant 0 : index
    %5 = vector.load %arg3[%c0_4, %c0_5] : memref<1024x10xf32, #tpu.memory_space<vmem>>, vector<1024x10xf32>
    %cst = arith.constant dense<0.000000e+00> : vector<8x10xf32>
    %6 = tpu.matmul %4, %5, %cst {dimension_numbers = #tpu.dot_dimension_numbers<[1], [0], [0], [1], [0, 0, 1, 1], [], []>} : vector<8x1024xf32>, vector<1024x10xf32>, vector<8x10xf32> -> vector<8x10xf32>
    %7 = arith.addf %3, %6 : vector<8x10xf32>
    %c0_6 = arith.constant 0 : index
    %c0_7 = arith.constant 0 : index
    %8 = vector.load %arg8[%c0_6, %c0_7] : memref<8x10xf32, #tpu.memory_space<vmem>>, vector<8x10xf32>
    tpu.vector_store %arg8[%c0_6, %c0_7], %7 {strides = array<i32>} : memref<8x10xf32, #tpu.memory_space<vmem>>, vector<8x10xf32>,
    %c0_i32_8 = arith.constant 0 : i32
    %9 = arith.cmpi eq, %arg1, %c0_i32_8 : i32
    %10 = arith.extui %9 : i1 to i32
    %c0_i32_9 = arith.constant 0 : i32
    %11 = arith.cmpi ne, %10, %c0_i32_9 : i32
    scf.if %11 {
      %c0_10 = arith.constant 0 : index
      %c0_11 = arith.constant 0 : index
      %12 = vector.load %arg8[%c0_10, %c0_11] : memref<8x10xf32, #tpu.memory_space<vmem>>, vector<8x10xf32>
      %c0_12 = arith.constant 0 : index
      %c0_13 = arith.constant 0 : index
      %13 = vector.load %arg4[%c0_12, %c0_13] : memref<1x10xf32, #tpu.memory_space<vmem>>, vector<1x10xf32>
      %14 = vector.broadcast %13 : vector<1x10xf32> to vector<8x10xf32>
      %15 = arith.addf %12, %14 : vector<8x10xf32>
      %c0_14 = arith.constant 0 : index
      %c0_15 = arith.constant 0 : index
      %16 = vector.load %arg6[%c0_14, %c0_15] : memref<8x10xf32, #tpu.memory_space<vmem>>, vector<8x10xf32>
      tpu.vector_store %arg6[%c0_14, %c0_15], %15 {strides = array<i32>} : memref<8x10xf32, #tpu.memory_space<vmem>>, vector<8x10xf32>,
      %c0_16 = arith.constant 0 : index
      %c0_17 = arith.constant 0 : index
      %17 = vector.load %arg5[%c0_16, %c0_17] : memref<8x10xf32, #tpu.memory_space<vmem>>, vector<8x10xf32>
      %18 = arith.subf %15, %17 : vector<8x10xf32>
      %19 = tpu.iota {dimensions = array<i32: 0>} : vector<8x10xi32>
      %c8_i32 = arith.constant 8 : i32
      %20 = arith.muli %arg0, %c8_i32 : i32
      %21 = vector.broadcast %20 : i32 to vector<8x10xi32>
      %22 = arith.addi %19, %21 : vector<8x10xi32>
      %c2_i32 = arith.constant 2 : i32
      %23 = vector.broadcast %c2_i32 : i32 to vector<8x10xi32>
      %24 = arith.cmpi slt, %22, %23 : vector<8x10xi32>
      %25 = arith.mulf %18, %18 : vector<8x10xf32>
      %cst_18 = arith.constant 0.000000e+00 : f32
      %26 = vector.broadcast %cst_18 : f32 to vector<8x10xf32>
      %27 = arith.select %24, %25, %26 : vector<8x10xi1>, vector<8x10xf32>
      %28 = vector.shape_cast %27 : vector<8x10xf32> to vector<1x8x10xf32>
      %cst_19 = arith.constant dense<0.000000e+00> : vector<1xf32>
      %29 = vector.multi_reduction <add>, %28, %cst_19 [1, 2] : vector<1x8x10xf32> to vector<1xf32>
      %30 = vector.shape_cast %29 : vector<1xf32> to vector<1x1x1xf32>
      %31 = vector.extract %30[0, 0, 0] : f32 from vector<1x1x1xf32>
      %c0_20 = arith.constant 0 : index
      %c0_21 = arith.constant 0 : index
      %32 = memref.load %arg7[%c0_20, %c0_21] : memref<1x1xf32, #tpu.memory_space<smem>>
      memref.store %31, %arg7[%c0_20, %c0_21] : memref<1x1xf32, #tpu.memory_space<smem>>
    } else {
    }
    return
  }
  func.func @transform_0(%arg0: i32, %arg1: i32) -> (i32, i32) {
    %c0_i32 = arith.constant 0 : i32
    return %arg0, %arg1 : i32, i32
  }
  func.func @transform_1(%arg0: i32, %arg1: i32) -> (i32, i32) {
    %c0_i32 = arith.constant 0 : i32
    %c0_i32_0 = arith.constant 0 : i32
    return %arg1, %c0_i32 : i32, i32
  }
  func.func @transform_2(%arg0: i32, %arg1: i32) -> (i32, i32) {
    %c0_i32 = arith.constant 0 : i32
    %c0_i32_0 = arith.constant 0 : i32
    %c0_i32_1 = arith.constant 0 : i32
    return %c0_i32, %c0_i32_0 : i32, i32
  }
  func.func @transform_3(%arg0: i32, %arg1: i32) -> (i32, i32) {
    %c0_i32 = arith.constant 0 : i32
    %c0_i32_0 = arith.constant 0 : i32
    return %arg0, %c0_i32 : i32, i32
  }
  func.func @transform_4(%arg0: i32, %arg1: i32) -> (i32, i32) {
    %c0_i32 = arith.constant 0 : i32
    %c0_i32_0 = arith.constant 0 : i32
    return %arg0, %c0_i32 : i32, i32
  }
  func.func @transform_5(%arg0: i32, %arg1: i32) -> (i32, i32) {
    %c0_i32 = arith.constant 0 : i32
    %c0_i32_0 = arith.constant 0 : i32
    return %arg0, %c0_i32 : i32, i32
  }
}

</mosaic_0001>

<bundles_post_ra>
// kernel: baseline_forward.1
= control target key start
LH: loop header
LB: loop body
LE: loop exit
PB: predicated region body
PF: predicated region fallthrough
CT: control target
= control target key end

     0   :  { %v919_v51 = vmov 1983009808   ;;  %v178_v53 = vlaneseq  ;;  %s1399_s0 = inlined_call_operand.vmem [shape: f32[2,1024], index: 0, kind: input, shape index: {}]   ;;  %s1400_s1 = inlined_call_operand.vmem [shape: f32[1024,10], index: 1, kind: input, shape index: {}]   ;;  %s1401_s2 = inlined_call_operand.vmem [shape: f32[1,10], index: 2, kind: input, shape index: {}]   ;;  %s1402_s3 = inlined_call_operand.vmem [shape: f32[2,10], index: 3, kind: input, shape index: {}]   ;;  %s1403_s4 = inlined_call_operand.vmem [shape: f32[2,10], index: 4, kind: output, shape index: {0}]   ;;  %s1404_s5 = inlined_call_operand.hbm [shape: f32[1,1], index: 5, kind: output, shape index: {1}]  }
   0x1   :  { %v51_v0 = vld [vmem:[%s1400_s1 + $0x80] sm:$0xff]  ;;  %v52_v1 = vld [vmem:[%s1400_s1 + $0x88] sm:$0xff]  ;;  %v53_v11 = vld [vmem:[%s1400_s1 + $0x90] sm:$0xff]  ;;  %v176_v52 = vunpack.c.l.s4 %v919_v51 }
   0x2   :  { %v83_v2 = vld [vmem:[%s1400_s1 + $0x180] sm:$0xff]  ;;  %v762_v3 = vpack.c.bf16 %v52_v1, %v51_v0  ;;  %v84_v4 = vld [vmem:[%s1400_s1 + $0x188] sm:$0xff]  ;;  %v54_v13 = vld [vmem:[%s1400_s1 + $0x98] sm:$0xff] }
   0x3   :  { %v35_v5 = vld [vmem:[%s1400_s1] sm:$0xff]  ;;  %v36_v6 = vld [vmem:[%s1400_s1 + $0x8] sm:$0xff]  ;;  %v794_v7 = vpack.c.bf16 %v84_v4, %v83_v2  ;;  %v85_v14 = vld [vmem:[%s1400_s1 + $0x190] sm:$0xff]  ;;  %v766_v16 = vpack.c.bf16 %v54_v13, %v53_v11  ;;  %v177_v4 = vunpack.c.0.s8 %v176_v52 }
   0x4   :  { %v764_v8 = vpack.c.bf16 %v36_v6, %v35_v5  ;;  %v67_v9 = vld [vmem:[%s1400_s1 + $0x100] sm:$0xff]  ;;  %v68_v10 = vld [vmem:[%s1400_s1 + $0x108] sm:$0xff]  ;;  %763 = vmatprep.subr.bf16.mxu0 %v762_v3  ;;  %v86_v15 = vld [vmem:[%s1400_s1 + $0x198] sm:$0xff]  ;;  %v1090_v5 = vshrl.u32 %v178_v53, 7 }
   0x5   :  { %v796_v12 = vpack.c.bf16 %v68_v10, %v67_v9  ;;  %795 = vmatprep.subr.bf16.mxu1 %v794_v7  ;;  %v798_v17 = vpack.c.bf16 %v86_v15, %v85_v14  ;;  %v37_v18 = vld [vmem:[%s1400_s1 + $0x10] sm:$0xff]  ;;  %v38_v19 = vld [vmem:[%s1400_s1 + $0x18] sm:$0xff]  ;;  %v55_v23 = vld [vmem:[%s1400_s1 + $0xa0] sm:$0xff] }
   0x6   :  { %765 = vmatpush3.bf16.msra.mxu0 %v764_v8  ;;  %v69_v20 = vld [vmem:[%s1400_s1 + $0x110] sm:$0xff]  ;;  %v768_v21 = vpack.c.bf16 %v38_v19, %v37_v18  ;;  %v70_v22 = vld [vmem:[%s1400_s1 + $0x118] sm:$0xff]  ;;  %v56_v24 = vld [vmem:[%s1400_s1 + $0xa8] sm:$0xff] }
   0x7   :  { %797 = vmatpush3.bf16.msra.mxu1 %v796_v12  ;;  %767 = vmatprep.subr.bf16.mxu0 %v766_v16  ;;  %v800_v25 = vpack.c.bf16 %v70_v22, %v69_v20  ;;  %v770_v26 = vpack.c.bf16 %v56_v24, %v55_v23  ;;  %v87_v27 = vld [vmem:[%s1400_s1 + $0x1a0] sm:$0xff]  ;;  %v88_v28 = vld [vmem:[%s1400_s1 + $0x1a8] sm:$0xff]  ;;  %v57_v35 = vld [vmem:[%s1400_s1 + $0xb0] sm:$0xff]  ;;  %v1129_v22 = vsub.s32 %v177_v4, %v1090_v5 }
   0x8   :  { %799 = vmatprep.subr.bf16.mxu1 %v798_v17  ;;  %v39_v29 = vld [vmem:[%s1400_s1 + $0x20] sm:$0xff]  ;;  %v802_v30 = vpack.c.bf16 %v88_v28, %v87_v27  ;;  %v40_v31 = vld [vmem:[%s1400_s1 + $0x28] sm:$0xff]  ;;  %v58_v36 = vld [vmem:[%s1400_s1 + $0xb8] sm:$0xff] }
   0x9   :  { %v71_v32 = vld [vmem:[%s1400_s1 + $0x120] sm:$0xff]  ;;  %v72_v33 = vld [vmem:[%s1400_s1 + $0x128] sm:$0xff]  ;;  %v772_v34 = vpack.c.bf16 %v40_v31, %v39_v29  ;;  %v89_v37 = vld [vmem:[%s1400_s1 + $0x1b0] sm:$0xff]  ;;  %v774_v39 = vpack.c.bf16 %v58_v36, %v57_v35 }
   0xa   :  { %769 = vmatpush3.bf16.msra.mxu0 %v768_v21  ;;  %v804_v38 = vpack.c.bf16 %v72_v33, %v71_v32  ;;  %v90_v40 = vld [vmem:[%s1400_s1 + $0x1b8] sm:$0xff]  ;;  %v41_v41 = vld [vmem:[%s1400_s1 + $0x30] sm:$0xff]  ;;  %v59_v46 = vld [vmem:[%s1400_s1 + $0xc0] sm:$0xff] }
   0xb   :  { %801 = vmatpush3.bf16.msra.mxu1 %v800_v25  ;;  %771 = vmatprep.subr.bf16.mxu0 %v770_v26  ;;  %v42_v42 = vld [vmem:[%s1400_s1 + $0x38] sm:$0xff]  ;;  %v806_v43 = vpack.c.bf16 %v90_v40, %v89_v37  ;;  %v73_v44 = vld [vmem:[%s1400_s1 + $0x130] sm:$0xff]  ;;  %v60_v47 = vld [vmem:[%s1400_s1 + $0xc8] sm:$0xff] }
   0xc   :  { %803 = vmatprep.subr.bf16.mxu1 %v802_v30  ;;  %v74_v45 = vld [vmem:[%s1400_s1 + $0x138] sm:$0xff]  ;;  %v91_v48 = vld [vmem:[%s1400_s1 + $0x1c0] sm:$0xff]  ;;  %v92_v49 = vld [vmem:[%s1400_s1 + $0x1c8] sm:$0xff]  ;;  %v776_v50 = vpack.c.bf16 %v42_v42, %v41_v41  ;;  %v778_v55 = vpack.c.bf16 %v60_v47, %v59_v46 }
   0xd   :  { %v808_v54 = vpack.c.bf16 %v74_v45, %v73_v44  ;;  %v43_v56 = vld [vmem:[%s1400_s1 + $0x40] sm:$0xff]  ;;  %v44_v57 = vld [vmem:[%s1400_s1 + $0x48] sm:$0xff]  ;;  %v810_v59 = vpack.c.bf16 %v92_v49, %v91_v48  ;;  %v61_v61 = vld [vmem:[%s1400_s1 + $0xd0] sm:$0xff] }
   0xe   :  { %773 = vmatpush3.bf16.msra.mxu0 %v772_v34  ;;  %v75_v58 = vld [vmem:[%s1400_s1 + $0x140] sm:$0xff]  ;;  %v76_v60 = vld [vmem:[%s1400_s1 + $0x148] sm:$0xff]  ;;  %v62_v62 = vld [vmem:[%s1400_s1 + $0xd8] sm:$0xff]  ;;  %v780_v1 = vpack.c.bf16 %v44_v57, %v43_v56 }
   0xf   :  { %805 = vmatpush3.bf16.msra.mxu1 %v804_v38  ;;  %775 = vmatprep.subr.bf16.mxu0 %v774_v39  ;;  %v93_v63 = vld [vmem:[%s1400_s1 + $0x1d0] sm:$0xff]  ;;  %v94_v0 = vld [vmem:[%s1400_s1 + $0x1d8] sm:$0xff]  ;;  %v812_v6 = vpack.c.bf16 %v76_v60, %v75_v58  ;;  %v782_v7 = vpack.c.bf16 %v62_v62, %v61_v61  ;;  %v63_v10 = vld [vmem:[%s1400_s1 + $0xe0] sm:$0xff] }
  0x10   :  { %807 = vmatprep.subr.bf16.mxu1 %v806_v43  ;;  %v45_v2 = vld [vmem:[%s1400_s1 + $0x50] sm:$0xff]  ;;  %v46_v3 = vld [vmem:[%s1400_s1 + $0x58] sm:$0xff]  ;;  %v814_v11 = vpack.c.bf16 %v94_v0, %v93_v63  ;;  %v64_v12 = vld [vmem:[%s1400_s1 + $0xe8] sm:$0xff] }
  0x11   :  { %v77_v8 = vld [vmem:[%s1400_s1 + $0x150] sm:$0xff]  ;;  %v78_v9 = vld [vmem:[%s1400_s1 + $0x158] sm:$0xff]  ;;  %v95_v13 = vld [vmem:[%s1400_s1 + $0x1e0] sm:$0xff]  ;;  %v784_v18 = vpack.c.bf16 %v46_v3, %v45_v2  ;;  %v786_v24 = vpack.c.bf16 %v64_v12, %v63_v10 }
  0x12   :  { %777 = vmatpush3.bf16.msra.mxu0 %v776_v50  ;;  %v96_v14 = vld [vmem:[%s1400_s1 + $0x1e8] sm:$0xff]  ;;  %v47_v15 = vld [vmem:[%s1400_s1 + $0x60] sm:$0xff]  ;;  %v65_v20 = vld [vmem:[%s1400_s1 + $0xf0] sm:$0xff]  ;;  %v816_v23 = vpack.c.bf16 %v78_v9, %v77_v8 }
  0x13   :  { %809 = vmatpush3.bf16.msra.mxu1 %v808_v54  ;;  %779 = vmatprep.subr.bf16.mxu0 %v778_v55  ;;  %v48_v16 = vld [vmem:[%s1400_s1 + $0x68] sm:$0xff]  ;;  %v79_v17 = vld [vmem:[%s1400_s1 + $0x160] sm:$0xff]  ;;  %v66_v21 = vld [vmem:[%s1400_s1 + $0xf8] sm:$0xff]  ;;  %v818_v27 = vpack.c.bf16 %v96_v14, %v95_v13 }
  0x14   :  { %811 = vmatprep.subr.bf16.mxu1 %v810_v59  ;;  %v80_v19 = vld [vmem:[%s1400_s1 + $0x168] sm:$0xff]  ;;  %v97_v25 = vld [vmem:[%s1400_s1 + $0x1f0] sm:$0xff]  ;;  %v98_v26 = vld [vmem:[%s1400_s1 + $0x1f8] sm:$0xff]  ;;  %v788_v32 = vpack.c.bf16 %v48_v16, %v47_v15  ;;  %v790_v34 = vpack.c.bf16 %v66_v21, %v65_v20 }
  0x15   :  { %v895_v28 = vld [vmem:[%s1399_s0] ss:$16 sps:$4 sm:$0xff]   ;;  %v899_v30 = vld [vmem:[%s1399_s0 + $0x4] ss:$16 sps:$4 sm:$0xff]   ;;  %v820_v33 = vpack.c.bf16 %v80_v19, %v79_v17  ;;  %v50_v37 = vld [vmem:[%s1400_s1 + $0x78] sm:$0xff]  ;;  %v822_v42 = vpack.c.bf16 %v98_v26, %v97_v25 }
  0x16   :  { %781 = vmatpush3.bf16.msra.mxu0 %v780_v1  ;;  %v897_v29 = vld [vmem:[%s1399_s0 + $0x20] ss:$16 sps:$4 sm:$0xff]   ;;  %v900_v31 = vld [vmem:[%s1399_s0 + $0x24] ss:$16 sps:$4 sm:$0xff]   ;;  %v181_v35 = vrot.slane %v895_v28, %v1129_v22  ;;  %v188_v40 = vrot.slane %v899_v30, %v1129_v22  ;;  %v82_v43 = vld [vmem:[%s1400_s1 + $0x178] sm:$0xff] }
  0x17   :  { %813 = vmatpush3.bf16.msra.mxu1 %v812_v6  ;;  %783 = vmatprep.subr.bf16.mxu0 %v782_v7  ;;  %v49_v36 = vld [vmem:[%s1400_s1 + $0x70] sm:$0xff]  ;;  %v195_v39 = vrot.slane %v897_v29, %v1129_v22  ;;  %v202_v41 = vrot.slane %v900_v31, %v1129_v22  ;;  %v115_v44 = vld [vmem:[%s1400_s1 + $0x280] sm:$0xff]  ;;  %v116_v45 = vld [vmem:[%s1400_s1 + $0x288] sm:$0xff] }
  0x18   :  { %815 = vmatprep.subr.bf16.mxu1 %v814_v11  ;;  %v81_v38 = vld [vmem:[%s1400_s1 + $0x170] sm:$0xff]  ;;  %v147_v48 = vld [vmem:[%s1400_s1 + $0x380] sm:$0xff]  ;;  %v148_v49 = vld [vmem:[%s1400_s1 + $0x388] sm:$0xff]  ;;  %v792_v50 = vpack.c.bf16 %v50_v37, %v49_v36  ;;  %v826_v52 = vpack.c.bf16 %v116_v45, %v115_v44 }
  0x19   :  { %v204_v46 = vcombine.high %v181_v35, %v195_v39  ;;  %v206_v47 = vcombine.high %v188_v40, %v202_v41  ;;  %v824_v51 = vpack.c.bf16 %v82_v43, %v81_v38  ;;  %v99_v53 = vld [vmem:[%s1400_s1 + $0x200] sm:$0xff]  ;;  %v100_v54 = vld [vmem:[%s1400_s1 + $0x208] sm:$0xff]  ;;  %v858_v56 = vpack.c.bf16 %v148_v49, %v147_v48  ;;  %v117_v58 = vld [vmem:[%s1400_s1 + $0x290] sm:$0xff] }
  0x1a   :  { %785 = vmatpush3.bf16.msra.mxu0 %v784_v18  ;;  %v131_v55 = vld [vmem:[%s1400_s1 + $0x300] sm:$0xff]  ;;  %v132_v57 = vld [vmem:[%s1400_s1 + $0x308] sm:$0xff]  ;;  %v118_v59 = vld [vmem:[%s1400_s1 + $0x298] sm:$0xff]  ;;  %v203_v60 = vcombine.low %v181_v35, %v195_v39  ;;  %v205_v63 = vcombine.low %v188_v40, %v202_v41  ;;  %v828_v0 = vpack.c.bf16 %v100_v54, %v99_v53 }
  0x1b   :  { %817 = vmatpush3.bf16.msra.mxu1 %v816_v23  ;;  %787 = vmatprep.subr.bf16.mxu0 %v786_v24  ;;  %v149_v61 = vld [vmem:[%s1400_s1 + $0x390] sm:$0xff]  ;;  %v150_v62 = vld [vmem:[%s1400_s1 + $0x398] sm:$0xff]  ;;  %v860_v1 = vpack.c.bf16 %v132_v57, %v131_v55  ;;  %v830_v2 = vpack.c.bf16 %v118_v59, %v117_v58  ;;  %v119_v9 = vld [vmem:[%s1400_s1 + $0x2a0] sm:$0xff] }
  0x1c   :  { %819 = vmatprep.subr.bf16.mxu1 %v818_v27  ;;  %315 = vmatprep.mubr.f32.mxu0 %v204_v46  ;;  %v101_v3 = vld [vmem:[%s1400_s1 + $0x210] sm:$0xff]  ;;  %v102_v4 = vld [vmem:[%s1400_s1 + $0x218] sm:$0xff]  ;;  %v862_v7 = vpack.c.bf16 %v150_v62, %v149_v61  ;;  %v120_v10 = vld [vmem:[%s1400_s1 + $0x2a8] sm:$0xff] }
  0x1d   :  { %385 = vmatprep.mubr.f32.mxu1 %v206_v47  ;;  %v133_v6 = vld [vmem:[%s1400_s1 + $0x310] sm:$0xff]  ;;  %v134_v8 = vld [vmem:[%s1400_s1 + $0x318] sm:$0xff]  ;;  %v151_v11 = vld [vmem:[%s1400_s1 + $0x3a0] sm:$0xff]  ;;  %v832_v13 = vpack.c.bf16 %v102_v4, %v101_v3  ;;  %v834_v15 = vpack.c.bf16 %v120_v10, %v119_v9 }
  0x1e   :  { %789 = vmatpush3.bf16.msra.mxu0 %v788_v32  ;;  %v152_v12 = vld [vmem:[%s1400_s1 + $0x3a8] sm:$0xff]  ;;  %v864_v14 = vpack.c.bf16 %v134_v8, %v133_v6  ;;  %v103_v16 = vld [vmem:[%s1400_s1 + $0x220] sm:$0xff]  ;;  %v121_v21 = vld [vmem:[%s1400_s1 + $0x2b0] sm:$0xff] }
  0x1f   :  { %821 = vmatpush3.bf16.msra.mxu1 %v820_v33  ;;  %791 = vmatprep.subr.bf16.mxu0 %v790_v34  ;;  %v104_v17 = vld [vmem:[%s1400_s1 + $0x228] sm:$0xff]  ;;  %v135_v18 = vld [vmem:[%s1400_s1 + $0x320] sm:$0xff]  ;;  %v866_v19 = vpack.c.bf16 %v152_v12, %v151_v11  ;;  %v122_v23 = vld [vmem:[%s1400_s1 + $0x2b8] sm:$0xff] }
  0x20   :  { %823 = vmatprep.subr.bf16.mxu1 %v822_v42  ;;  %v136_v20 = vld [vmem:[%s1400_s1 + $0x328] sm:$0xff]  ;;  %v153_v24 = vld [vmem:[%s1400_s1 + $0x3b0] sm:$0xff]  ;;  %v154_v25 = vld [vmem:[%s1400_s1 + $0x3b8] sm:$0xff]  ;;  %v836_v26 = vpack.c.bf16 %v104_v17, %v103_v16  ;;  %v838_v28 = vpack.c.bf16 %v122_v23, %v121_v21 }
  0x21   :  { %v868_v27 = vpack.c.bf16 %v136_v20, %v135_v18  ;;  %v105_v29 = vld [vmem:[%s1400_s1 + $0x230] sm:$0xff]  ;;  %v106_v30 = vld [vmem:[%s1400_s1 + $0x238] sm:$0xff]  ;;  %v870_v32 = vpack.c.bf16 %v154_v25, %v153_v24  ;;  %v123_v34 = vld [vmem:[%s1400_s1 + $0x2c0] sm:$0xff] }
  0x22   :  { %793 = vmatpush3.bf16.msra.mxu0 %v792_v50  ;;  %v137_v31 = vld [vmem:[%s1400_s1 + $0x330] sm:$0xff]  ;;  %v138_v33 = vld [vmem:[%s1400_s1 + $0x338] sm:$0xff]  ;;  %v124_v35 = vld [vmem:[%s1400_s1 + $0x2c8] sm:$0xff]  ;;  %v840_v41 = vpack.c.bf16 %v106_v30, %v105_v29 }
  0x23   :  { %825 = vmatpush3.bf16.msra.mxu1 %v824_v51  ;;  %827 = vmatprep.subr.bf16.mxu0 %v826_v52  ;;  %v107_v36 = vld [vmem:[%s1400_s1 + $0x240] sm:$0xff]  ;;  %v108_v37 = vld [vmem:[%s1400_s1 + $0x248] sm:$0xff]  ;;  %v125_v43 = vld [vmem:[%s1400_s1 + $0x2d0] sm:$0xff]  ;;  %v872_v45 = vpack.c.bf16 %v138_v33, %v137_v31  ;;  %v842_v46 = vpack.c.bf16 %v124_v35, %v123_v34 }
  0x24   :  { %859 = vmatprep.subr.bf16.mxu1 %v858_v56  ;;  %v155_v38 = vld [vmem:[%s1400_s1 + $0x3c0] sm:$0xff]  ;;  %v156_v39 = vld [vmem:[%s1400_s1 + $0x3c8] sm:$0xff]  ;;  %v126_v44 = vld [vmem:[%s1400_s1 + $0x2d8] sm:$0xff]  ;;  %v844_v54 = vpack.c.bf16 %v108_v37, %v107_v36 }
  0x25   :  { %316 = vmatmul.mubr.f32.vlgmr.msra.gmra.mrb[0].mxu0 %v203_v60  ;;  %v139_v40 = vld [vmem:[%s1400_s1 + $0x340] sm:$0xff]  ;;  %v140_v42 = vld [vmem:[%s1400_s1 + $0x348] sm:$0xff]  ;;  %v157_v47 = vld [vmem:[%s1400_s1 + $0x3d0] sm:$0xff]  ;;  %v874_v49 = vpack.c.bf16 %v156_v39, %v155_v38  ;;  %v846_v56 = vpack.c.bf16 %v126_v44, %v125_v43 }
  0x26   :  { %386 = vmatmul.mubr.f32.vlgmr.msra.gmra.mrb[0].mxu1 %v205_v63  ;;  %829 = vmatpush3.bf16.msra.mxu0 %v828_v0  ;;  %v158_v48 = vld [vmem:[%s1400_s1 + $0x3d8] sm:$0xff]  ;;  %v876_v55 = vpack.c.bf16 %v140_v42, %v139_v40 }
  0x27   :  { %861 = vmatpush3.bf16.msra.mxu1 %v860_v1  ;;  %831 = vmatprep.subr.bf16.mxu0 %v830_v2  ;;  %v901_v50 = vld [vmem:[%s1399_s0 + $0x8] ss:$16 sps:$4 sm:$0xff]   ;;  %v905_v52 = vld [vmem:[%s1399_s0 + $0xc] ss:$16 sps:$4 sm:$0xff]  }
  0x28   :  { %863 = vmatprep.subr.bf16.mxu1 %v862_v7  ;;  %v903_v51 = vld [vmem:[%s1399_s0 + $0x28] ss:$16 sps:$4 sm:$0xff]   ;;  %v906_v53 = vld [vmem:[%s1399_s0 + $0x2c] ss:$16 sps:$4 sm:$0xff]   ;;  %v217_v57 = vrot.slane %v901_v50, %v1129_v22 }
  0x2a   :  { %833 = vmatpush3.bf16.msra.mxu0 %v832_v13 }
  0x2b   :  { %865 = vmatpush3.bf16.msra.mxu1 %v864_v14  ;;  %835 = vmatprep.subr.bf16.mxu0 %v834_v15 }
  0x2c   :  { %867 = vmatprep.subr.bf16.mxu1 %v866_v19 }
  0x2e   :  { %837 = vmatpush3.bf16.msra.mxu0 %v836_v26 }
  0x2f   :  { %869 = vmatpush3.bf16.msra.mxu1 %v868_v27  ;;  %839 = vmatprep.subr.bf16.mxu0 %v838_v28 }
  0x30   :  { %871 = vmatprep.subr.bf16.mxu1 %v870_v32 }
  0x32   :  { %841 = vmatpush3.bf16.msra.mxu0 %v840_v41 }
  0x33   :  { %11 = vsyncpa [#allocation5], 0  ;;  %873 = vmatpush3.bf16.msra.mxu1 %v872_v45  ;;  %843 = vmatprep.subr.bf16.mxu0 %v842_v46  ;;  %v109_v58 = vld [vmem:[%s1400_s1 + $0x250] sm:$0xff]  ;;  %v110_v59 = vld [vmem:[%s1400_s1 + $0x258] sm:$0xff]  ;;  %v231_v61 = vrot.slane %v903_v51, %v1129_v22  ;;  %v224_v62 = vrot.slane %v905_v52, %v1129_v22  ;;  %v238_v63 = vrot.slane %v906_v53, %v1129_v22  ;;  %vm24_vm0 = vcmask 80896   ;;  %s907_s19 = scalar_lea.hbm %s1404_s5, 16 }
  0x34   :  { %v141_v60 = vld [vmem:[%s1400_s1 + $0x350] sm:$0xff]  ;;  %875 = vmatprep.subr.bf16.mxu1 %v874_v49  ;;  %v878_v0 = vpack.c.bf16 %v158_v48, %v157_v47  ;;  %v142_v1 = vld [vmem:[%s1400_s1 + $0x358] sm:$0xff]  ;;  %v127_v2 = vld [vmem:[%s1400_s1 + $0x2e0] sm:$0xff]  ;;  %v848_v8 = vpack.c.bf16 %v110_v59, %v109_v58  ;;  %v920_v33 = vmov 0.0   ;;  %vm554_vm1 = vcmp.lt.s32.totalorder %v1090_v5, 2  ;;  %p908_p0 = scmp.ne.s32.totalorder %s1404_s5, %s907_s19  ;;  %p911_p1 = scmp.lt.u32.totalorder %s907_s19, %s1404_s5 }
  0x35   :  { %v128_v3 = vld [vmem:[%s1400_s1 + $0x2e8] sm:$0xff]  ;;  %v159_v4 = vld [vmem:[%s1400_s1 + $0x3e0] sm:$0xff]  ;;  %v240_v6 = vcombine.high %v217_v57, %v231_v61  ;;  %v242_v7 = vcombine.high %v224_v62, %v238_v63  ;;  %v880_v9 = vpack.c.bf16 %v142_v1, %v141_v60  ;;  %v129_v16 = vld [vmem:[%s1400_s1 + $0x2f0] sm:$0xff]  ;;  %v239_v31 = vcombine.low %v217_v57, %v231_v61  ;;  %25 = vst.msk [vmem:[#allocation2] sm:$0xff] %vm24_vm0, %v920_v33 }
  0x36   :  { %v160_v22 = vld [vmem:[%s1400_s1 + $0x3e8] sm:$0xff]  ;;  %845 = vmatpush3.bf16.msra.mxu0 %v844_v54  ;;  %v850_v10 = vpack.c.bf16 %v128_v3, %v127_v2  ;;  %v111_v11 = vld [vmem:[%s1400_s1 + $0x260] sm:$0xff]  ;;  %v130_v17 = vld [vmem:[%s1400_s1 + $0x2f8] sm:$0xff]  ;;  %v241_v32 = vcombine.low %v224_v62, %v238_v63  ;;  %p913_p2 = pnand %p911_p1, %p908_p0 }
  0x37   :  { %877 = vmatpush3.bf16.msra.mxu1 %v876_v55  ;;  %847 = vmatprep.subr.bf16.mxu0 %v846_v56  ;;  %v112_v12 = vld [vmem:[%s1400_s1 + $0x268] sm:$0xff]  ;;  %v143_v13 = vld [vmem:[%s1400_s1 + $0x360] sm:$0xff]  ;;  %v882_v14 = vpack.c.bf16 %v160_v22, %v159_v4  ;;  %v161_v18 = vld [vmem:[%s1400_s1 + $0x3f0] sm:$0xff]  ;;  %v854_v23 = vpack.c.bf16 %v130_v17, %v129_v16 }
  0x38   :  { %879 = vmatprep.subr.bf16.mxu1 %v878_v0  ;;  %v144_v15 = vld [vmem:[%s1400_s1 + $0x368] sm:$0xff]  ;;  %455 = vmatprep.mubr.f32.mxu0 %v240_v6  ;;  %v162_v19 = vld [vmem:[%s1400_s1 + $0x3f8] sm:$0xff]  ;;  %v852_v20 = vpack.c.bf16 %v112_v12, %v111_v11  ;;  %v113_v24 = vld [vmem:[%s1400_s1 + $0x270] sm:$0xff] }
  0x39   :  { %525 = vmatprep.mubr.f32.mxu1 %v242_v7  ;;  %v884_v21 = vpack.c.bf16 %v144_v15, %v143_v13  ;;  %v114_v25 = vld [vmem:[%s1400_s1 + $0x278] sm:$0xff]  ;;  %v886_v26 = vpack.c.bf16 %v162_v19, %v161_v18  ;;  %v145_v27 = vld [vmem:[%s1400_s1 + $0x370] sm:$0xff]  ;;  %v621_v51 = vld [vmem:[%s1401_s2] ss:$0 sm:$0xff] }
  0x3a   :  { %849 = vmatpush3.bf16.msra.mxu0 %v848_v8  ;;  %v146_v28 = vld [vmem:[%s1400_s1 + $0x378] sm:$0xff]  ;;  %v856_v29 = vpack.c.bf16 %v114_v25, %v113_v24  ;;  %v547_v53 = vld [vmem:[%s1402_s3] sm:$0xff] }
  0x3b   :  { %881 = vmatpush3.bf16.msra.mxu1 %v880_v9  ;;  %851 = vmatprep.subr.bf16.mxu0 %v850_v10  ;;  %v888_v30 = vpack.c.bf16 %v146_v28, %v145_v27 }
  0x3c   :  { %883 = vmatprep.subr.bf16.mxu1 %v882_v14  ;;  %v26_v48 = vld [vmem:[#allocation2] sm:$0xff] }
  0x3e   :  { %853 = vmatpush3.bf16.msra.mxu0 %v852_v20 }
  0x3f   :  { %885 = vmatpush3.bf16.msra.mxu1 %v884_v21  ;;  %855 = vmatprep.subr.bf16.mxu0 %v854_v23 }
  0x40   :  { %887 = vmatprep.subr.bf16.mxu1 %v886_v26 }
  0x42   :  { %857 = vmatpush3.bf16.msra.mxu0 %v856_v29 }
  0x43   :  { %889 = vmatpush3.bf16.msra.mxu1 %v888_v30 }
  0x45   :  { %456 = vmatmul.mubr.f32.vlgmr.msra.gmra.mrb[2].mxu0 %v239_v31 }
  0x46   :  { %526 = vmatmul.mubr.f32.vlgmr.msra.gmra.mrb[2].mxu1 %v241_v32 }
  0xf8   :  { %v654_v34 = vpop.f32.mrb[0].mxu0 }
  0xf9   :  { %v689_v35 = vpop.f32.mrb[0].mxu1  ;;  %v655_v36 = vpop.f32.mrb[1].mxu0 }
  0xfa   :  { %v656_v37 = vadd.f32 %v655_v36, %v654_v34  ;;  %v690_v38 = vpop.f32.mrb[1].mxu1 }
  0xfb   :  { %v691_v39 = vadd.f32 %v690_v38, %v689_v35 }
  0xfd   :  { %v388_v40 = vadd.f32 %v691_v39, %v656_v37 }
 0x118   :  { %v724_v41 = vpop.f32.mrb[2].mxu0 }
 0x119   :  { %v725_v42 = vpop.f32.mrb[3].mxu0  ;;  %v759_v43 = vpop.f32.mrb[2].mxu1 }
 0x11a   :  { %v726_v44 = vadd.f32 %v725_v42, %v724_v41  ;;  %v760_v45 = vpop.f32.mrb[3].mxu1 }
 0x11b   :  { %v761_v46 = vadd.f32 %v760_v45, %v759_v43 }
 0x11c   :  { %v458_v47 = vadd.f32 %v726_v44, %v388_v40 }
 0x11e   :  { %v528_v49 = vadd.f32 %v761_v46, %v458_v47 }
 0x120   :  { %v531_v50 = vadd.f32 %v528_v49, %v26_v48 }
 0x122   :  { %533 = vst.msk [vmem:[#allocation2] sm:$0xff] %vm24_vm0, %v531_v50 }
 0x129   :  { %v537_v52 = vld [vmem:[#allocation2] sm:$0xff] }
 0x12a   :  { %v545_v54 = vadd.f32 %v621_v51, %v537_v52 }
 0x12c   :  { %546 = vst.msk [vmem:[#allocation3] sm:$0xff] %vm24_vm0, %v545_v54  ;;  %v548_v55 = vsub.f32 %v545_v54, %v547_v53 }
 0x12e   :  { %v555_v56 = vmul.f32 %v548_v55, %v548_v55 }
 0x130   :  { %v556_v57 = vsel %vm554_vm1, %v555_v56, 0.0 }
 0x131   :  { %v557_v58 = vsel %vm24_vm0, %v556_v57, 0.0 }
 0x132   :  { %558 = vadd.xlane.f32.xlu0 %v557_v58 }
 0x133   :  { %v586_v59 = vld [vmem:[#allocation3] sm:$0x3] }
 0x134   :  { %587 = vst [vmem:[%s1403_s4] sm:$0x3] %v586_v59 }
 0x1bf   :  { %v559_v60 = vpop.xlane.xlu0 %558 }
 0x1c0   :  { %v560_v61 = vrot.slane %v559_v60, 4 }
 0x1c2   :  { %v561_v62 = vadd.f32 %v560_v61, %v559_v60 }
 0x1c4   :  { %v562_v63 = vrot.slane %v561_v62, 2 }
 0x1c6   :  { %v563_v0 = vadd.f32 %v562_v63, %v561_v62 }
 0x1c8   :  { %v564_v1 = vrot.slane %v563_v0, 1 }
 0x1ca   :  { %v565_v2 = vadd.f32 %v564_v1, %v563_v0 }
 0x1cc   :  { %890 = vpush %v565_v2 }
 0x1fd   :  { %s891_s2 = spop %890 }
 0x1fe   :  { %568 = sst [smem:[#allocation4]] %s891_s2 }
 0x1ff   :  { %916 = shalt.err (!%p913_p2)
}
 0x200   :  { %s921_s23 = smov [#allocation4]  }
 0x201   :  { %609 = dma.smem_to_hbm %s921_s23, 16, %s1404_s5, [#allocation5]  }
 0x202   :  { %917 = dma.done.wait [#allocation5], 16  }
 0x203   :  { %918 = vsyncadd [#allocation5], 4294967280 }
 0x204   :  { %615 = sfence }
 0x205   :  { %616 = vsyncpa [#allocation5], 1 }

</bundles_post_ra>
